<compile_context>
chip_gen: v7x
topology: tpu7x:2x2x1
jax: 0.10.0
libtpu: 0.0.40
codegen_flags: <defaults>
</compile_context>

<pallas_src>
import functools

import jax
import jax.numpy as jnp
from jax.experimental import pallas as pl
from jax.experimental.pallas import tpu as pltpu

BN_EPS = 1e-5
LANE = 128
NEG_INF = -1e30                     # MaxPool padding value (nn.MaxPool2d ignores pads)
VMEM_LIMIT = 32 * 1024 * 1024       # safe on v5e/v6e/v7x; all tiles here are tiny


def _round_up(x, m):
    return ((x + m - 1) // m) * m


def _cpad(c):
    return _round_up(c, LANE)


# --------------------------------------------------------------------------
# Phase-split + row-flattened layout:
# For a KxK stride-s conv on a zero-padded input, splitting the padded plane
# into s*s phases (pure reshape/transpose, no duplication) and flattening each
# phase row-major makes every tap a CONTIGUOUS row-slice at a static offset:
#   output row m = h*Wq + w  reads  phase[(i%s)*s + j%s] row  m + (i//s)*Wq + (j//s)
# Columns w in [Wo, Wq) of the wide output are row-wrap garbage, sliced away.
# --------------------------------------------------------------------------
def _conv_geometry(H, W, kh, kw, stride, pad):
    s = stride
    Hp, Wp = H + 2 * pad, W + 2 * pad
    Ho = (Hp - kh) // s + 1
    Wo = (Wp - kw) // s + 1
    Hq = -(-Hp // s)
    Wq = -(-Wp // s)
    taps = []
    for i in range(kh):
        for j in range(kw):
            taps.append(((i % s) * s + (j % s), (i // s) * Wq + (j // s), i * kw + j))
    max_off = max(off for _, off, _ in taps)
    Mw = Ho * Wq
    Mr = _round_up(Mw, 8)
    return dict(s=s, pad=pad, Ho=Ho, Wo=Wo, Hq=Hq, Wq=Wq, taps=taps,
                Mw=Mw, Mr=Mr, l_buf=Mr + max_off)


def _phase_split_flat(x, g, pad_value=0.0):
    """(N,H,W,C) -> (N, s*s, l_buf, C): per-phase, row-flattened padded input."""
    N, H, W, C = x.shape
    s, pad, Hq, Wq, l_buf = g["s"], g["pad"], g["Hq"], g["Wq"], g["l_buf"]
    xp = jnp.pad(x, ((0, 0), (pad, s * Hq - H - pad), (pad, s * Wq - W - pad), (0, 0)),
                 constant_values=pad_value)
    xq = xp.reshape(N, Hq, s, Wq, s, C).transpose(0, 2, 4, 1, 3, 5)
    flat = xq.reshape(N, s * s, Hq * Wq, C)
    L = Hq * Wq
    if L >= l_buf:
        flat = flat[:, :, :l_buf, :]
    else:
        flat = jnp.pad(flat, ((0, 0), (0, 0), (0, l_buf - L), (0, 0)),
                       constant_values=pad_value)
    return flat


def _to_wide(a, Wq, Mr):
    """(N, Ho, Wo, C) -> (N, Mr, C) rows laid out as h*Wq + w."""
    N, Ho, Wo, C = a.shape
    a = jnp.pad(a, ((0, 0), (0, 0), (0, Wq - Wo), (0, 0)))
    a = a.reshape(N, Ho * Wq, C)
    if Mr > a.shape[1]:
        a = jnp.pad(a, ((0, 0), (0, Mr - a.shape[1]), (0, 0)))
    return a


def _from_wide(y, Ho, Wo, Wq):
    N, _, C = y.shape
    return y[:, :Ho * Wq, :].reshape(N, Ho, Wq, C)[:, :, :Wo, :]


# --------------------------------------------------------------------------
# Kernels
# --------------------------------------------------------------------------
def _stem_kernel(x_ref, w_ref, b_ref, o_ref):
    """Stem 7x7 s2 conv as one dense im2col matmul (+ folded BN bias + ReLU)."""
    acc = jnp.dot(x_ref[...], w_ref[...], preferred_element_type=jnp.float32)
    o_ref[...] = jnp.maximum(acc + b_ref[...], 0.0).astype(o_ref.dtype)


def _make_pool_kernel(taps, m):
    def kernel(xph_ref, o_ref):
        phase0, off0, _ = taps[0]
        acc = xph_ref[phase0, pl.ds(off0, m), :]
        for phase, off, _ in taps[1:]:
            acc = jnp.maximum(acc, xph_ref[phase, pl.ds(off, m), :])
        o_ref[...] = acc
    return kernel


def _make_block_kernel(taps1, cin, cmid, m1, ho1, wo1, wq1, wq2, m2, mode):
    """Fused BasicBlock: conv1+ReLU -> VMEM scratch -> conv2 -> +res/down -> ReLU."""

    def kernel(xph_ref, w1_ref, b1_ref, w2_ref, b2_ref, *rest):
        if mode == "down":
            idw_ref, wd_ref, o_ref, scr_ref = rest
        else:
            res_ref, o_ref, scr_ref = rest

        # ---- conv1: tap-sum over the phase-split block input (BN folded), ReLU
        acc1 = None
        for phase, off, k in taps1:
            t = jnp.dot(xph_ref[phase, pl.ds(off, m1), :],
                        w1_ref[k * cin:(k + 1) * cin, :],
                        preferred_element_type=jnp.float32)
            acc1 = t if acc1 is None else acc1 + t
        h1 = jnp.maximum(acc1 + b1_ref[...], 0.0).astype(jnp.bfloat16)   # (m1, cmid)

        # ---- place conv1 output into conv2's zero-padded plane (VMEM scratch)
        scr_ref[...] = jnp.zeros_like(scr_ref)
        for h in range(ho1):
            dst = (h + 1) * wq2 + 1
            scr_ref[dst:dst + wo1, :] = h1[h * wq1:h * wq1 + wo1, :]

        # ---- conv2: 3x3 stride-1 tap-sum on the scratch (BN folded)
        acc2 = None
        for i in range(3):
            for j in range(3):
                k = i * 3 + j
                off = i * wq2 + j
                t = jnp.dot(scr_ref[off:off + m2, :],
                            w2_ref[k * cmid:(k + 1) * cmid, :],
                            preferred_element_type=jnp.float32)
                acc2 = t if acc2 is None else acc2 + t
        acc2 = acc2 + b2_ref[...]

        # ---- residual add / fused 1x1 stride-s downsample conv
        if mode == "down":
            acc2 = acc2 + jnp.dot(idw_ref[...], wd_ref[...],
                                  preferred_element_type=jnp.float32)
        else:
            acc2 = acc2 + res_ref[...].astype(jnp.float32)

        o_ref[...] = jnp.maximum(acc2, 0.0).astype(o_ref.dtype)

    return kernel


def _pool_fc_kernel(x_ref, w_ref, b_ref, o_ref, *, inv_hw):
    pooled = jnp.sum(x_ref[...].astype(jnp.float32), axis=1) * inv_hw     # (N, C)
    acc = jnp.dot(pooled.astype(jnp.bfloat16), w_ref[...],
                  preferred_element_type=jnp.float32)
    o_ref[...] = acc + b_ref[...]


# --------------------------------------------------------------------------
# Layer wrappers (pallas_call plumbing)
# --------------------------------------------------------------------------
def stem_conv(x_nhwc, layer):
    """7x7 s2 p3 conv (BN folded) + ReLU, dense im2col contraction (no 3->128 pad)."""
    N, H, W, C = x_nhwc.shape
    kh, kw, s, pad = layer["kh"], layer["kw"], layer["stride"], layer["pad"]
    Ho = (H + 2 * pad - kh) // s + 1
    Wo = (W + 2 * pad - kw) // s + 1
    xp = jnp.pad(x_nhwc, ((0, 0), (pad, pad), (pad, pad), (0, 0)))
    cols = [xp[:, i:i + s * Ho:s, j:j + s * Wo:s, :]
            for i in range(kh) for j in range(kw)]
    patches = jnp.concatenate(cols, axis=-1)                # (N, Ho, Wo, kh*kw*C)
    K = kh * kw * C
    Kp, Cout = layer["w"].shape                             # K padded to 128 mult
    patches = jnp.pad(patches, ((0, 0), (0, 0), (0, 0), (0, Kp - K)))
    M = Ho * Wo
    Mr = _round_up(M, 8)
    flat = patches.reshape(N, M, Kp).astype(jnp.bfloat16)
    if Mr > M:
        flat = jnp.pad(flat, ((0, 0), (0, Mr - M), (0, 0)))

    out = pl.pallas_call(
        _stem_kernel,
        out_shape=jax.ShapeDtypeStruct((N, Mr, Cout), jnp.bfloat16),
        grid=(N,),
        in_specs=[pl.BlockSpec((None, Mr, Kp), lambda b: (b, 0, 0)),
                  pl.BlockSpec((Kp, Cout), lambda b: (0, 0)),
                  pl.BlockSpec((1, Cout), lambda b: (0, 0))],
        out_specs=pl.BlockSpec((None, Mr, Cout), lambda b: (b, 0, 0)),
        compiler_params=pltpu.CompilerParams(
            dimension_semantics=("parallel",), vmem_limit_bytes=VMEM_LIMIT),
        cost_estimate=pl.CostEstimate(
            flops=int(2 * N * Mr * Kp * Cout), transcendentals=0,
            bytes_accessed=int(flat.size * 2 + layer["w"].size * 2 + N * Mr * Cout * 2)),
    )(flat, layer["w"], layer["b"])
    return out[:, :M, :].reshape(N, Ho, Wo, Cout)


def maxpool2d(x, ksize=3, stride=2, pad=1):
    N, H, W, C = x.shape
    g = _conv_geometry(H, W, ksize, ksize, stride, pad)
    xph = _phase_split_flat(x, g, pad_value=NEG_INF)
    out = pl.pallas_call(
        _make_pool_kernel(g["taps"], g["Mr"]),
        out_shape=jax.ShapeDtypeStruct((N, g["Mr"], C), x.dtype),
        grid=(N,),
        in_specs=[pl.BlockSpec((None, g["s"] * g["s"], g["l_buf"], C),
                               lambda b: (b, 0, 0, 0))],
        out_specs=pl.BlockSpec((None, g["Mr"], C), lambda b: (b, 0, 0)),
        compiler_params=pltpu.CompilerParams(
            dimension_semantics=("parallel",), vmem_limit_bytes=VMEM_LIMIT),
    )(xph)
    return _from_wide(out, g["Ho"], g["Wo"], g["Wq"])


def basic_block(x, blk):
    """One pallas_call per BasicBlock (conv1+ReLU, conv2, +residual/downsample, ReLU)."""
    N, H, W, Cin = x.shape
    c1, c2 = blk["conv1"], blk["conv2"]
    s1 = c1["stride"]
    Cmid = c1["w"].shape[1]
    Cout = c2["w"].shape[1]

    g1 = _conv_geometry(H, W, 3, 3, s1, 1)                 # block-conv1 geometry
    Ho1, Wo1, Wq1 = g1["Ho"], g1["Wo"], g1["Wq"]
    Hq2, Wq2 = Ho1 + 2, Wo1 + 2                            # conv2 zero-padded plane
    M2 = Ho1 * Wq2
    M2r = _round_up(M2, 8)
    scr_rows = _round_up(max(Hq2 * Wq2, M2r + 2 * Wq2 + 2), 8)

    xph = _phase_split_flat(x, g1)                         # (N, s1*s1, l_buf, Cin)

    in_specs = [
        pl.BlockSpec((None, g1["s"] ** 2, g1["l_buf"], Cin), lambda b: (b, 0, 0, 0)),
        pl.BlockSpec((9 * Cin, Cmid), lambda b: (0, 0)),
        pl.BlockSpec((1, Cmid), lambda b: (0, 0)),
        pl.BlockSpec((9 * Cmid, Cout), lambda b: (0, 0)),
        pl.BlockSpec((1, Cout), lambda b: (0, 0)),
    ]
    b2 = c2["b"]
    if "down" in blk:
        mode = "down"
        b2 = b2 + blk["down"]["b"]                         # fold downsample-BN bias
        ident = x[:, ::s1, ::s1, :]                        # 1x1 stride-s gather
        idw = _to_wide(ident, Wq2, M2r).astype(jnp.bfloat16)     # (N, M2r, Cin)
        extra = [idw, blk["down"]["w"]]
        in_specs += [pl.BlockSpec((None, M2r, Cin), lambda b: (b, 0, 0)),
                     pl.BlockSpec((Cin, Cout), lambda b: (0, 0))]
        extra_flops = 2 * N * M2r * Cin * Cout
    else:
        mode = "res"
        resw = _to_wide(x, Wq2, M2r).astype(jnp.bfloat16)        # (N, M2r, Cout)
        extra = [resw]
        in_specs += [pl.BlockSpec((None, M2r, Cout), lambda b: (b, 0, 0))]
        extra_flops = 0

    args = [xph, c1["w"], c1["b"], c2["w"], b2] + extra
    flops = 2 * N * (g1["Mr"] * 9 * Cin * Cmid + M2r * 9 * Cmid * Cout) + extra_flops
    bytes_acc = sum(int(a.size) * a.dtype.itemsize for a in args) + N * M2r * Cout * 2

    out = pl.pallas_call(
        _make_block_kernel(g1["taps"], Cin, Cmid, g1["Mr"], Ho1, Wo1, Wq1, Wq2,
                           M2r, mode),
        out_shape=jax.ShapeDtypeStruct((N, M2r, Cout), jnp.bfloat16),
        grid=(N,),
        in_specs=in_specs,
        out_specs=pl.BlockSpec((None, M2r, Cout), lambda b: (b, 0, 0)),
        scratch_shapes=[pltpu.VMEM((scr_rows, Cmid), jnp.bfloat16)],
        compiler_params=pltpu.CompilerParams(
            dimension_semantics=("parallel",), vmem_limit_bytes=VMEM_LIMIT),
        cost_estimate=pl.CostEstimate(flops=int(flops), transcendentals=0,
                                      bytes_accessed=int(bytes_acc)),
    )(*args)
    return _from_wide(out, Ho1, Wo1, Wq2)


def avgpool_fc(x, fc_w, fc_b, num_classes):
    N, H, W, C = x.shape
    HW = H * W
    xf = x.reshape(N, HW, C)
    ncp = fc_w.shape[1]
    out = pl.pallas_call(
        functools.partial(_pool_fc_kernel, inv_hw=1.0 / HW),
        out_shape=jax.ShapeDtypeStruct((N, ncp), jnp.float32),
        grid=(1,),
        in_specs=[pl.BlockSpec((N, HW, C), lambda j: (0, 0, 0)),
                  pl.BlockSpec((C, ncp), lambda j: (0, 0)),
                  pl.BlockSpec((1, ncp), lambda j: (0, 0))],
        out_specs=pl.BlockSpec((N, ncp), lambda j: (0, 0)),
        compiler_params=pltpu.CompilerParams(
            dimension_semantics=("arbitrary",), vmem_limit_bytes=VMEM_LIMIT),
    )(xf, fc_w, fc_b)
    return out[:, :num_classes]


# --------------------------------------------------------------------------
# ResNet (BasicBlock, expansion = 1) parameters & forward
# --------------------------------------------------------------------------
def init_resnet_params(key, layers=(1, 1, 1, 1), num_classes=10):
    keys = iter(jax.random.split(key, 128))

    def bn_scale(cout):
        gamma = jax.random.normal(next(keys), (cout,), jnp.float32) * 0.01
        # BN inference form at init: running_mean=0, running_var=1, beta=0.
        return gamma / jnp.sqrt(1.0 + BN_EPS)

    def conv_bn_layer(cin, cout, kh, kw, stride, pad):
        cinp, coutp = _cpad(cin), _cpad(cout)
        w = jax.random.normal(next(keys), (kh, kw, cin, cout), jnp.float32) * 0.01
        w = w * bn_scale(cout)[None, None, None, :]          # fold BN scale into W
        w = jnp.pad(w, ((0, 0), (0, 0), (0, cinp - cin), (0, coutp - cout)))
        return {"w": w.reshape(kh * kw * cinp, coutp).astype(jnp.bfloat16),
                "b": jnp.zeros((1, coutp), jnp.float32),     # beta - mean*scale = 0
                "kh": kh, "kw": kw, "stride": stride, "pad": pad}

    def stem_layer(cin, cout, kh, kw, stride, pad):
        # Stem keeps its real 3 input channels: dense im2col contraction K=kh*kw*cin.
        coutp = _cpad(cout)
        K = kh * kw * cin
        Kp = _round_up(K, LANE)
        w = jax.random.normal(next(keys), (kh, kw, cin, cout), jnp.float32) * 0.01
        w = w * bn_scale(cout)[None, None, None, :]
        w = jnp.pad(w.reshape(K, cout), ((0, Kp - K), (0, coutp - cout)))
        return {"w": w.astype(jnp.bfloat16),
                "b": jnp.zeros((1, coutp), jnp.float32),
                "kh": kh, "kw": kw, "stride": stride, "pad": pad}

    params = {"conv1": stem_layer(3, 64, 7, 7, 2, 3)}

    inplanes = 64
    stages = []
    for sidx, (planes, nblocks) in enumerate(zip((64, 128, 256, 512), layers)):
        stride = 1 if sidx == 0 else 2
        blocks = []
        for bidx in range(nblocks):
            s = stride if bidx == 0 else 1
            blk = {"conv1": conv_bn_layer(inplanes, planes, 3, 3, s, 1),
                   "conv2": conv_bn_layer(planes, planes, 3, 3, 1, 1)}
            if bidx == 0 and (s != 1 or inplanes != planes):
                blk["down"] = conv_bn_layer(inplanes, planes, 1, 1, s, 0)
            inplanes = planes
            blocks.append(blk)
        stages.append(blocks)
    params["stages"] = stages

    # TODO(synk): nn.Linear keeps its default (Kaiming-uniform) init in the spec;
    # a normal(0, 0.01) stand-in is used here — forward math is unchanged.
    ncp = _cpad(num_classes)
    fc_w = jax.random.normal(next(keys), (512, num_classes), jnp.float32) * 0.01
    params["fc_w"] = jnp.pad(fc_w, ((0, 0), (0, ncp - num_classes))).astype(jnp.bfloat16)
    params["fc_b"] = jnp.zeros((1, ncp), jnp.float32)
    params["num_classes"] = num_classes
    return params


def resnet_forward(params, x_nchw):
    # PyTorch NCHW input -> NHWC; stem consumes the real 3 channels (no 3->128 pad).
    x = jnp.transpose(x_nchw, (0, 2, 3, 1))
    x = stem_conv(x, params["conv1"])                # conv7x7 s2 + BN + ReLU
    x = maxpool2d(x, 3, 2, 1)                        # maxpool 3x3 s2 p1
    for blocks in params["stages"]:
        for blk in blocks:
            x = basic_block(x, blk)                  # fused conv1+conv2(+down)+ReLU
    return avgpool_fc(x, params["fc_w"], params["fc_b"], params["num_classes"])


if __name__ == "__main__":
    key = jax.random.PRNGKey(0)
    k_in, k_params = jax.random.split(key)

    # batch=2, 3 input channels, 32x32 spatial (consistent with the module)
    x = jax.random.normal(k_in, (2, 3, 32, 32), jnp.float32)

    params = init_resnet_params(k_params, layers=(1, 1, 1, 1), num_classes=10)

    out = resnet_forward(params, x)
    out = jax.block_until_ready(out)
    assert out.shape == (2, 10), out.shape
    print("KERNEL_OK")
</pallas_src>

<mosaic_0001>
module attributes {stable_mosaic.version = 11 : i64} {
  func.func @_stem_kernel(%arg0: i32, %arg1: memref<1x256x256xbf16, #tpu.memory_space<vmem>>, %arg2: memref<256x128xbf16, #tpu.memory_space<vmem>>, %arg3: memref<1x128xf32, #tpu.memory_space<vmem>>, %arg4: memref<1x256x128xbf16, #tpu.memory_space<vmem>>) attributes {dimension_semantics = [#tpu.dimension_semantics<parallel>], iteration_bounds = array<i64: 2>, scalar_prefetch = 0 : i64, scratch_operands = 0 : i64, tpu.core_type = #tpu.core_type<tc>, window_params = [{transform_indices = @transform_0, window_bounds = array<i64: 1, 256, 256>}, {pipeline_mode = #tpu.pipeline_mode<synchronous>, transform_indices = @transform_1, window_bounds = array<i64: 256, 128>}, {pipeline_mode = #tpu.pipeline_mode<synchronous>, transform_indices = @transform_2, window_bounds = array<i64: 1, 128>}, {transform_indices = @transform_3, window_bounds = array<i64: 1, 256, 128>}]} {
    %c0 = arith.constant 0 : index
    %c0_0 = arith.constant 0 : index
    %c0_1 = arith.constant 0 : index
    %0 = vector.load %arg1[%c0, %c0_0, %c0_1] : memref<1x256x256xbf16, #tpu.memory_space<vmem>>, vector<1x256x256xbf16>
    %1 = vector.shape_cast %0 : vector<1x256x256xbf16> to vector<256x256xbf16>
    %c0_2 = arith.constant 0 : index
    %c0_3 = arith.constant 0 : index
    %2 = vector.load %arg2[%c0_2, %c0_3] : memref<256x128xbf16, #tpu.memory_space<vmem>>, vector<256x128xbf16>
    %cst = arith.constant dense<0.000000e+00> : vector<256x128xf32>
    %3 = tpu.matmul %1, %2, %cst {dimension_numbers = #tpu.dot_dimension_numbers<[1], [0], [0], [1], [0, 0, 1, 1], [], []>} : vector<256x256xbf16>, vector<256x128xbf16>, vector<256x128xf32> -> vector<256x128xf32>
    %c0_4 = arith.constant 0 : index
    %c0_5 = arith.constant 0 : index
    %4 = vector.load %arg3[%c0_4, %c0_5] : memref<1x128xf32, #tpu.memory_space<vmem>>, vector<1x128xf32>
    %5 = vector.broadcast %4 : vector<1x128xf32> to vector<256x128xf32>
    %6 = arith.addf %3, %5 : vector<256x128xf32>
    %cst_6 = arith.constant 0.000000e+00 : f32
    %7 = vector.broadcast %cst_6 : f32 to vector<256x128xf32>
    %8 = arith.maximumf %6, %7 : vector<256x128xf32>
    %9 = arith.truncf %8 : vector<256x128xf32> to vector<256x128xbf16>
    %c0_7 = arith.constant 0 : index
    %c0_8 = arith.constant 0 : index
    %c0_9 = arith.constant 0 : index
    %10 = vector.load %arg4[%c0_7, %c0_8, %c0_9] : memref<1x256x128xbf16, #tpu.memory_space<vmem>>, vector<1x256x128xbf16>
    %11 = vector.shape_cast %10 : vector<1x256x128xbf16> to vector<256x128xbf16>
    %12 = vector.shape_cast %9 : vector<256x128xbf16> to vector<1x256x128xbf16>
    tpu.vector_store %arg4[%c0_7, %c0_8, %c0_9], %12 {strides = array<i32>} : memref<1x256x128xbf16, #tpu.memory_space<vmem>>, vector<1x256x128xbf16>,
    return
  }
  func.func @transform_0(%arg0: i32) -> (i32, i32, i32) {
    %c0_i32 = arith.constant 0 : i32
    %c0_i32_0 = arith.constant 0 : i32
    %c0_i32_1 = arith.constant 0 : i32
    return %arg0, %c0_i32, %c0_i32_0 : i32, i32, i32
  }
  func.func @transform_1(%arg0: i32) -> (i32, i32) {
    %c0_i32 = arith.constant 0 : i32
    %c0_i32_0 = arith.constant 0 : i32
    %c0_i32_1 = arith.constant 0 : i32
    return %c0_i32, %c0_i32_0 : i32, i32
  }
  func.func @transform_2(%arg0: i32) -> (i32, i32) {
    %c0_i32 = arith.constant 0 : i32
    %c0_i32_0 = arith.constant 0 : i32
    %c0_i32_1 = arith.constant 0 : i32
    return %c0_i32, %c0_i32_0 : i32, i32
  }
  func.func @transform_3(%arg0: i32) -> (i32, i32, i32) {
    %c0_i32 = arith.constant 0 : i32
    %c0_i32_0 = arith.constant 0 : i32
    %c0_i32_1 = arith.constant 0 : i32
    return %arg0, %c0_i32, %c0_i32_0 : i32, i32, i32
  }
}

</mosaic_0001>

<bundles_post_ra>
// kernel: tpu_custom_call.1
= control target key start
LH: loop header
LB: loop body
LE: loop exit
PB: predicated region body
PF: predicated region fallthrough
CT: control target
= control target key end

     0   :  { %8 = vsyncpa [#allocation3], 0  ;;  %s1914_s0 = inlined_call_operand.hbm [shape: bf16[2,256,256], index: 0, kind: input, shape index: {}]   ;;  %s1915_s1 = inlined_call_operand.hbm [shape: bf16[256,128], index: 1, kind: input, shape index: {}]   ;;  %s1916_s2 = inlined_call_operand.vmem [shape: f32[1,128], index: 2, kind: input, shape index: {}]   ;;  %s1917_s3 = inlined_call_operand.hbm [shape: bf16[2,256,128], index: 3, kind: output, shape index: {}]  }
   0x1   :  { %10 = vsyncpa [#allocation3 + $0x1], 0 }
   0x2   :  { %11 = vsyncpa [#allocation6], 0 }
   0x3   :  { %12 = vsyncpa [#allocation4], 0 }
   0x4   :  { %14 = vsyncpa [#allocation4 + $0x1], 0  ;;  %s1622_s12 = smov 0   ;;  %s1624_s13 = smov 0  }
   0x5   :  { %s1626_s14 = smov 0   ;;  %s1628_s15 = smov 0  }
   0x6 LB: > { %s1643_s16 = sadd.s32 4294967295, %s1591_s15   ;;  %s982_s17 = sadd.s32 4294967294, %s1591_s15   ;;  %s1591_s15 = sphi %s1628_s15, %s1937_s15   ;;  %s1587_s14 = sphi %s1626_s14, %s1936_s14   ;;  %s1583_s13 = sphi %s1624_s13, %s1935_s13   ;;  %s1579_s12 = sphi %s1622_s12, %s1934_s12  }
   0x7   : > { %p40_p0 = scmp.ne.s32.totalorder %s1583_s13, %s1579_s12  ;;  %p1918_p1 = scmp.eq.s32.totalorder %s1643_s16, 0 }
   0x8   : > { %p112_p3 = scmp.eq.s32.totalorder %s982_s17, 1  ;;  %p983_p5 = scmp.ge.s32.totalorder %s1591_s15, 1 }
   0x9   : > { %p1652_p4 = por %p1918_p1, %p40_p0  ;;  %p119_p7 = scmp.lt.s32.totalorder %s1591_s15, 3 }
   0xa   : > { %p1657_p6 = por %p112_p3, %p40_p0  ;;  %s1593_s21 = smov [#allocation5]  }
   0xb   : > { %s1921_s18 = scalar_select %p1652_p4, 1, 0 }
   0xc   : > { %s1922_s19 = scalar_select %p1657_p6, 1, 0 }
   0xd   : > { %p1662_p8 = pnand %p983_p5, %p119_p7  ;;  %s131_s22 = sshll.u32 %s1593_s21, 4  ;;  %s1666_s22 = int_to_ptr.vmem [resolvable:$true] %s131_s22 }
   0xe   : > { %s1678_s24 = sadd.s32 1, %s1591_s15   ;;  %s27_s25 = sadd.s32 1, %s1587_s14 }
   0xf   : > { %s1923_s20 = scalar_select %p1662_p8, 1, 0 }
  0x10   : > { %p1344_p9 = pneg %p1662_p8  ;;  %s24_s26 = ssub.s32 %s1591_s15, %s1678_s24 }
  0x11   : > { %s1463_s29 = scalar_lea.hbm %s1915_s1, 2048 }
  0x12   : > { %p1673_p11 = pnand %p1344_p9, %p1918_p1  ;;  %p1464_p12 = scmp.ne.s32.totalorder %s1915_s1, %s1463_s29 }
  0x13   : > { %p1470_p5 = scmp.lt.u32.totalorder %s1463_s29, %s1915_s1 }
  0x14   : > { %p1465_p13 = pneg %p1673_p11 }
  0x16   : > { %p1466_p0 = pnand %p1465_p13, %p1464_p12 }
  0x18   : > { %p1467_p3 = pneg %p1466_p0 }
  0x1a   : > { %p1472_p7 = pnand %p1470_p5, %p1467_p3 }
  0x1c   : > { %1475 = shalt.err (!%p1472_p7)
}
  0x1d   : > { %s1476_s7 = scalar_lea.vmem %s1666_s22, 2048  ;;  %p1484_p2 = scmp.lt.s32.totalorder %s1666_s22, %s1666_s22 }
  0x1e   : > { %p1477_p9 = scmp.ne.s32.totalorder %s1666_s22, %s1476_s7  ;;  %p1485_p6 = scmp.lt.s32.totalorder %s1476_s7, %s1476_s7 }
  0x20   : > { %p1479_p10 = pnand %p1477_p9, %p1465_p13  ;;  %p1486_p4 = por %p1485_p6, %p1484_p2 }
  0x22   : > { %p1480_p1 = pneg %p1479_p10 }
  0x24   : > { %p1487_p8 = pnand %p1486_p4, %p1480_p1 }
  0x26   : > { %1490 = shalt.err (!%p1487_p8)
}
  0x27   : > { %s1594_s8 = smov 64   ;;  %s1595_s9 = smov 4  }
  0x28   : > { %1347 = dma.hbm_to_vmem [thread:$0]  (!%p1673_p11), %s1915_s1, 2048, %s1666_s22, [#allocation6], %s1594_s8, %s1594_s8, %s1595_s9  }
  0x29   : > { %p25_p2 = scmp.eq.s32.totalorder %s24_s26, 0  ;;  %p34_p1 = scmp.ne.s32.totalorder %s1587_s14, %s1583_s13 }
  0x2a   : > { %p35_p4 = scmp.eq.s32.totalorder %s1591_s15, 0  ;;  %p1357_p6 = scmp.lt.s32.totalorder %s1591_s15, 2 }
  0x2b   : > { %s1709_s17 = scalar_select %p25_p2, %s1587_s14, %s27_s25  }
  0x2c   : > { %p36_p8 = por %p35_p4, %p34_p1  ;;  %p1925_p10 = scmp.eq.s32.totalorder %s1643_s16, 1 }
  0x2d   : > { %s148_s27 = sand.u32 1, %s1587_s14   ;;  %s1079_s28 = sshll.u32 %s1591_s15, 12 }
  0x2e   : > { %p1713_p12 = por %p1925_p10, %p34_p1  ;;  %s986_s29 = sshll.u32 %s148_s27, 8 }
  0x2f   : > { %s1722_s4 = scalar_lea.hbm %s1914_s0, %s1079_s28  ;;  %s152_s22 = scalar_lea.vmem [#allocation2], %s986_s29 }
  0x30   : > { %s159_s25 = sshll.u32 %s152_s22, 4  ;;  %p1724_p11 = pnand %p1357_p6, %p36_p8  ;;  %s1728_s25 = int_to_ptr.vmem [resolvable:$true] %s159_s25 }
  0x31   : > { %s1730_s5 = scalar_lea.sflag [#allocation3], %s148_s27  ;;  %s1491_s6 = scalar_lea.hbm %s1722_s4, 4096 }
  0x32   : > { %p1492_p13 = scmp.ne.s32.totalorder %s1722_s4, %s1491_s6  ;;  %p1493_p0 = pneg %p1724_p11 }
  0x33   : > { %s1496_s9 = scalar_lea.hbm %s1914_s0, 8192  ;;  %p1497_p7 = scmp.lt.u32.totalorder %s1722_s4, %s1914_s0 }
  0x34   : > { %p1494_p3 = pnand %p1493_p0, %p1492_p13  ;;  %p1498_p9 = scmp.lt.u32.totalorder %s1496_s9, %s1491_s6 }
  0x35   : > { %p1500_p1 = scmp.lt.u32.totalorder %s1491_s6, %s1722_s4 }
  0x36   : > { %p1495_p5 = pneg %p1494_p3  ;;  %p1499_p2 = por %p1498_p9, %p1497_p7 }
  0x38   : > { %p1501_p4 = por %p1500_p1, %p1499_p2 }
  0x3a   : > { %p1502_p6 = pnand %p1501_p4, %p1495_p5 }
  0x3c   : > { %1505 = shalt.err (!%p1502_p6)
}
  0x3d   : > { %s1506_s27 = scalar_lea.vmem %s1728_s25, 4096  ;;  %s1596_s28 = smov [#allocation2]  }
  0x3e   : > { %p1507_p8 = scmp.ne.s32.totalorder %s1728_s25, %s1506_s27  ;;  %s1511_s29 = sshll.u32 %s1596_s28, 4  ;;  %s1512_s29 = int_to_ptr.vmem [resolvable:$false] %s1511_s29 }
  0x3f   : > { %s1513_s23 = scalar_lea.vmem %s1512_s29, 8192  ;;  %p1514_p3 = scmp.lt.s32.totalorder %s1728_s25, %s1512_s29 }
  0x40   : > { %p1509_p10 = pnand %p1507_p8, %p1493_p0  ;;  %p1515_p7 = scmp.lt.s32.totalorder %s1513_s23, %s1506_s27 }
  0x42   : > { %p1510_p13 = pneg %p1509_p10  ;;  %p1516_p9 = por %p1515_p7, %p1514_p3 }
  0x44   : > { %p1517_p2 = pnand %p1516_p9, %p1510_p13 }
  0x46   : > { %1520 = shalt.err (!%p1517_p2)
}
  0x47   : > { %s1597_s30 = smov 128   ;;  %s1598_s22 = smov 8  }
  0x48   : > { %1351 = dma.hbm_to_vmem [thread:$0]  (!%p1724_p11), %s1722_s4, 4096, %s1728_s25, %s1730_s5, %s1597_s30, %s1597_s30, %s1598_s22  }
  0x49   : > { %p1928_p0 = scmp.ne.s32.totalorder %s1923_s20, 0 }
  0x4a   : > { %s1761_s6 = sand.u32 (!%p1928_p0), 1, %s1583_s13   ;;  %p1929_p5 = scmp.ne.s32.totalorder (!%p1928_p0), %s1921_s18, 0 }
  0x4b   : > { %171 = sbr.rel (%p1928_p0) target bundleno = 414 (0x19e), region = 32  ;;  %s990_s7 = sshll.u32 (!%p1928_p0), %s1761_s6, 8 }
  0x4c   : > { %s174_s8 = scalar_lea.sflag (!%p1928_p0), [#allocation3], %s1761_s6  ;;  %s1765_s9 = scalar_lea.vmem (!%p1928_p0), [#allocation2], %s990_s7 }
  0x52   : > { %1566 = dma.done.wait (%p1929_p5), %s174_s8, 4096  }
  0x53   : > { %1568 = vsyncadd (%p1929_p5), %s174_s8, 4294963200  ;;  %p1930_p11 = scmp.eq.s32.totalorder %s1643_s16, 0 }
  0x55   : > { %1570 = dma.done.wait (%p1930_p11), [#allocation6], 2048   ;;  %p1931_p1 = pmov %p1930_p11 }
  0x56   : > { %v1399_v0 = vld [vmem:[#allocation5 + $0x40] sm:$0xff]   ;;  %v1401_v2 = vld [vmem:[#allocation5 + $0x48] sm:$0xff]   ;;  %v1403_v4 = vld [vmem:[#allocation5 + $0x50] sm:$0xff]   ;;  %s992_s4 = sshll.u32 %s1761_s6, 7  ;;  %s1112_s26 = sshll.u32 %s1643_s16, 11 }
  0x57   : > { %1572 = vsyncadd (%p1931_p1), [#allocation6], 4294965248  ;;  %v1400_v1 = vld [vmem:[#allocation5] sm:$0xff]   ;;  %1208 = vmatprep.subr.bf16.mxu0 %v1399_v0  ;;  %1320 = vmatprep.subr.bf16.mxu1 %v1399_v0  ;;  %v1402_v3 = vld [vmem:[#allocation5 + $0x8] sm:$0xff]   ;;  %s1817_s25 = scalar_lea.vmem [#allocation7], %s992_s4  ;;  %s1866_s27 = scalar_lea.hbm %s1917_s3, %s1112_s26 }
  0x58   : > { %1209 = vmatpush3.bf16.msra.mxu0 %v1400_v1  ;;  %1328 = vmatpush3.bf16.msra.mxu1 %v1400_v1  ;;  %v1404_v5 = vld [vmem:[#allocation5 + $0x10] sm:$0xff]   ;;  %v1405_v6 = vld [vmem:[#allocation5 + $0x58] sm:$0xff]   ;;  %v1407_v8 = vld [vmem:[#allocation5 + $0x60] sm:$0xff]   ;;  %s899_s5 = sshll.u32 %s1817_s25, 4  ;;  %s886_s16 = scalar_lea.sflag [#allocation4], %s1761_s6  ;;  %s1868_s5 = int_to_ptr.vmem [resolvable:$true] %s899_s5 }
  0x59   : > { %1210 = vmatprep.subr.bf16.mxu0 %v1401_v2  ;;  %1321 = vmatprep.subr.bf16.mxu1 %v1401_v2  ;;  %v1406_v7 = vld [vmem:[#allocation5 + $0x18] sm:$0xff]   ;;  %v1408_v9 = vld [vmem:[#allocation5 + $0x20] sm:$0xff]   ;;  %v1409_v10 = vld [vmem:[#allocation5 + $0x68] sm:$0xff]   ;;  %s1521_s28 = scalar_lea.vmem %s1868_s5, 2048  ;;  %s1599_s29 = smov [#allocation7]  }
  0x5a   : > { %v1417_v11 = vld [vmem:[%s1765_s9 + $0x4] ss:$8 sps:$4 sm:$0xff]   ;;  %v1411_v14 = vld [vmem:[#allocation5 + $0x70] sm:$0xff]   ;;  %v1413_v16 = vld [vmem:[#allocation5 + $0x78] sm:$0xff]   ;;  %p1522_p4 = scmp.ne.s32.totalorder %s1868_s5, %s1521_s28  ;;  %s1525_s23 = sshll.u32 %s1599_s29, 4  ;;  %s1526_s23 = int_to_ptr.vmem [resolvable:$false] %s1525_s23 }
  0x5b   : > { %v1420_v12 = vld [vmem:[%s1765_s9 + $0x84] ss:$8 sps:$4 sm:$0xff]   ;;  %564 = vmatprep.mubr.bf16.mxu0 %v1417_v11  ;;  %v1412_v15 = vld [vmem:[#allocation5 + $0x30] sm:$0xff]   ;;  %v1414_v17 = vld [vmem:[#allocation5 + $0x38] sm:$0xff]   ;;  %s1527_s30 = scalar_lea.vmem %s1526_s23, 4096  ;;  %p1528_p10 = scmp.lt.s32.totalorder %s1868_s5, %s1526_s23 }
  0x5c   : > { %1211 = vmatpush3.bf16.msra.mxu0 %v1402_v3  ;;  %1329 = vmatpush3.bf16.msra.mxu1 %v1402_v3  ;;  %v1410_v13 = vld [vmem:[#allocation5 + $0x28] sm:$0xff]   ;;  %v1421_v20 = vld [vmem:[%s1765_s9 + $0x14] ss:$8 sps:$4 sm:$0xff]   ;;  %v1425_v22 = vld [vmem:[%s1765_s9 + $0x10] ss:$8 sps:$4 sm:$0xff]   ;;  %p1523_p6 = pnand %p1522_p4, %p1713_p12  ;;  %p1529_p13 = scmp.lt.s32.totalorder %s1527_s30, %s1521_s28 }
  0x5d   : > { %1212 = vmatprep.subr.bf16.mxu0 %v1403_v4  ;;  %1322 = vmatprep.subr.bf16.mxu1 %v1403_v4  ;;  %v1415_v18 = vld [vmem:[%s1765_s9] ss:$8 sps:$4 sm:$0xff]   ;;  %v1423_v21 = vld [vmem:[%s1765_s9 + $0x94] ss:$8 sps:$4 sm:$0xff]   ;;  %v1426_v23 = vld [vmem:[%s1765_s9 + $0x90] ss:$8 sps:$4 sm:$0xff]  }
  0x5e   : > { %628 = vmatprep.mubr.bf16.mxu1 %v1420_v12  ;;  %v1418_v19 = vld [vmem:[%s1765_s9 + $0x80] ss:$8 sps:$4 sm:$0xff]   ;;  %v1427_v24 = vld [vmem:[%s1765_s9 + $0x24] ss:$8 sps:$4 sm:$0xff]   ;;  %v1433_v28 = vld [vmem:[%s1765_s9 + $0x34] ss:$8 sps:$4 sm:$0xff]   ;;  %p1524_p8 = pneg %p1523_p6  ;;  %p1530_p3 = por %p1529_p13, %p1528_p10 }
  0x5f   : > { %v1429_v25 = vld [vmem:[%s1765_s9 + $0xa4] ss:$8 sps:$4 sm:$0xff]   ;;  %v1431_v26 = vld [vmem:[%s1765_s9 + $0x20] ss:$8 sps:$4 sm:$0xff]   ;;  %v1435_v29 = vld [vmem:[%s1765_s9 + $0xb4] ss:$8 sps:$4 sm:$0xff]  }
  0x60   : > { %1213 = vmatpush3.bf16.msra.mxu0 %v1404_v5  ;;  %1330 = vmatpush3.bf16.msra.mxu1 %v1404_v5  ;;  %v1432_v27 = vld [vmem:[%s1765_s9 + $0xa0] ss:$8 sps:$4 sm:$0xff]   ;;  %v1437_v30 = vld [vmem:[%s1765_s9 + $0x30] ss:$8 sps:$4 sm:$0xff]   ;;  %v1439_v32 = vld [vmem:[%s1765_s9 + $0x44] ss:$8 sps:$4 sm:$0xff]   ;;  %p1531_p7 = pnand %p1530_p3, %p1524_p8 }
  0x61   : > { %1214 = vmatprep.subr.bf16.mxu0 %v1405_v6  ;;  %1323 = vmatprep.subr.bf16.mxu1 %v1405_v6  ;;  %v1438_v31 = vld [vmem:[%s1765_s9 + $0xb0] ss:$8 sps:$4 sm:$0xff]   ;;  %v1441_v33 = vld [vmem:[%s1765_s9 + $0xc4] ss:$8 sps:$4 sm:$0xff]   ;;  %v1443_v34 = vld [vmem:[%s1765_s9 + $0x40] ss:$8 sps:$4 sm:$0xff]  }
  0x62   : > { %v1444_v35 = vld [vmem:[%s1765_s9 + $0xc0] ss:$8 sps:$4 sm:$0xff]   ;;  %v1445_v36 = vld [vmem:[%s1765_s9 + $0x54] ss:$8 sps:$4 sm:$0xff]   ;;  %v1449_v38 = vld [vmem:[%s1765_s9 + $0x50] ss:$8 sps:$4 sm:$0xff]  }
  0x63   : > { %v1447_v37 = vld [vmem:[%s1765_s9 + $0xd4] ss:$8 sps:$4 sm:$0xff]   ;;  %v1450_v39 = vld [vmem:[%s1765_s9 + $0xd0] ss:$8 sps:$4 sm:$0xff]   ;;  %v1451_v40 = vld [vmem:[%s1765_s9 + $0x64] ss:$8 sps:$4 sm:$0xff]  }
  0x64   : > { %1215 = vmatpush3.bf16.msra.mxu0 %v1406_v7  ;;  %1331 = vmatpush3.bf16.msra.mxu1 %v1406_v7  ;;  %v1453_v41 = vld [vmem:[%s1765_s9 + $0xe4] ss:$8 sps:$4 sm:$0xff]   ;;  %v1455_v42 = vld [vmem:[%s1765_s9 + $0x60] ss:$8 sps:$4 sm:$0xff]   ;;  %v1457_v44 = vld [vmem:[%s1765_s9 + $0x74] ss:$8 sps:$4 sm:$0xff]  }
  0x65   : > { %1216 = vmatprep.subr.bf16.mxu0 %v1407_v8  ;;  %1324 = vmatprep.subr.bf16.mxu1 %v1407_v8  ;;  %v1456_v43 = vld [vmem:[%s1765_s9 + $0xe0] ss:$8 sps:$4 sm:$0xff]   ;;  %v1459_v45 = vld [vmem:[%s1765_s9 + $0xf4] ss:$8 sps:$4 sm:$0xff]   ;;  %v1461_v46 = vld [vmem:[%s1765_s9 + $0x70] ss:$8 sps:$4 sm:$0xff]  }
  0x66   : > { %v1462_v47 = vld [vmem:[%s1765_s9 + $0xf0] ss:$8 sps:$4 sm:$0xff]   ;;  %v1810_v50 = vld [vmem:[%s1916_s2] ss:$0 sm:$0xff] }
  0x68   : > { %1217 = vmatpush3.bf16.msra.mxu0 %v1408_v9  ;;  %1332 = vmatpush3.bf16.msra.mxu1 %v1408_v9 }
  0x69   : > { %1218 = vmatprep.subr.bf16.mxu0 %v1409_v10  ;;  %1325 = vmatprep.subr.bf16.mxu1 %v1409_v10 }
  0x6c   : > { %1219 = vmatpush3.bf16.msra.mxu0 %v1410_v13  ;;  %1333 = vmatpush3.bf16.msra.mxu1 %v1410_v13 }
  0x6d   : > { %1220 = vmatprep.subr.bf16.mxu0 %v1411_v14  ;;  %1326 = vmatprep.subr.bf16.mxu1 %v1411_v14 }
  0x70   : > { %1221 = vmatpush3.bf16.msra.mxu0 %v1412_v15  ;;  %1334 = vmatpush3.bf16.msra.mxu1 %v1412_v15 }
  0x71   : > { %1222 = vmatprep.subr.bf16.mxu0 %v1413_v16  ;;  %1327 = vmatprep.subr.bf16.mxu1 %v1413_v16 }
  0x74   : > { %1223 = vmatpush3.bf16.msra.mxu0 %v1414_v17  ;;  %1335 = vmatpush3.bf16.msra.mxu1 %v1414_v17 }
  0x77   : > { %565 = vmatmul.mubr.bf16.vlgmr.msra.gmra.mrb[0].mxu0 %v1415_v18  ;;  %629 = vmatmul.mubr.bf16.vlgmr.msra.gmra.mrb[0].mxu1 %v1418_v19 }
  0x78   : > { %572 = vmatprep.mubr.bf16.mxu0 %v1421_v20  ;;  %636 = vmatprep.mubr.bf16.mxu1 %v1423_v21 }
  0x7f   : > { %573 = vmatmul.mubr.bf16.gmra.mrb[4].mxu0 %v1425_v22  ;;  %637 = vmatmul.mubr.bf16.gmra.mrb[4].mxu1 %v1426_v23 }
  0x80   : > { %580 = vmatprep.mubr.bf16.mxu0 %v1427_v24  ;;  %644 = vmatprep.mubr.bf16.mxu1 %v1429_v25 }
  0x87   : > { %581 = vmatmul.mubr.bf16.gmra.mrb[8].mxu0 %v1431_v26  ;;  %645 = vmatmul.mubr.bf16.gmra.mrb[8].mxu1 %v1432_v27 }
  0x88   : > { %588 = vmatprep.mubr.bf16.mxu0 %v1433_v28  ;;  %652 = vmatprep.mubr.bf16.mxu1 %v1435_v29 }
  0x8f   : > { %589 = vmatmul.mubr.bf16.gmra.mrb[12].mxu0 %v1437_v30  ;;  %653 = vmatmul.mubr.bf16.gmra.mrb[12].mxu1 %v1438_v31 }
  0x90   : > { %596 = vmatprep.mubr.bf16.mxu0 %v1439_v32  ;;  %660 = vmatprep.mubr.bf16.mxu1 %v1441_v33 }
  0x97   : > { %597 = vmatmul.mubr.bf16.gmra.mrb[16].mxu0 %v1443_v34  ;;  %661 = vmatmul.mubr.bf16.gmra.mrb[16].mxu1 %v1444_v35 }
  0x98   : > { %604 = vmatprep.mubr.bf16.mxu0 %v1445_v36  ;;  %668 = vmatprep.mubr.bf16.mxu1 %v1447_v37 }
  0x9f   : > { %605 = vmatmul.mubr.bf16.gmra.mrb[20].mxu0 %v1449_v38  ;;  %669 = vmatmul.mubr.bf16.gmra.mrb[20].mxu1 %v1450_v39 }
  0xa0   : > { %612 = vmatprep.mubr.bf16.mxu0 %v1451_v40  ;;  %676 = vmatprep.mubr.bf16.mxu1 %v1453_v41 }
  0xa7   : > { %613 = vmatmul.mubr.bf16.gmra.mrb[24].mxu0 %v1455_v42  ;;  %677 = vmatmul.mubr.bf16.gmra.mrb[24].mxu1 %v1456_v43 }
  0xa8   : > { %620 = vmatprep.mubr.bf16.mxu0 %v1457_v44  ;;  %684 = vmatprep.mubr.bf16.mxu1 %v1459_v45 }
  0xaf   : > { %621 = vmatmul.mubr.bf16.gmra.mrb[28].mxu0 %v1461_v46  ;;  %685 = vmatmul.mubr.bf16.gmra.mrb[28].mxu1 %v1462_v47 }
 0x14a   : > { %v1224_v48 = vpop.f32.mrb[0].mxu0  ;;  %v1272_v49 = vpop.f32.mrb[0].mxu1 }
 0x14b   : > { %v1225_v51 = vpop.f32.mrb[1].mxu0  ;;  %v1273_v52 = vpop.f32.mrb[1].mxu1 }
 0x14c   : > { %v1226_v53 = vadd.f32 %v1225_v51, %v1224_v48  ;;  %v1274_v54 = vadd.f32 %v1273_v52, %v1272_v49  ;;  %v1227_v55 = vpop.f32.mrb[2].mxu0  ;;  %v1275_v56 = vpop.f32.mrb[2].mxu1 }
 0x14d   : > { %v1228_v57 = vpop.f32.mrb[3].mxu0  ;;  %v1276_v58 = vpop.f32.mrb[3].mxu1 }
 0x14e   : > { %v567_v59 = vadd.f32 %v1226_v53, %v1810_v50  ;;  %v631_v60 = vadd.f32 %v1274_v54, %v1810_v50  ;;  %v1229_v61 = vadd.f32 %v1228_v57, %v1227_v55  ;;  %v1277_v62 = vadd.f32 %v1276_v58, %v1275_v56 }
 0x150   : > { %v570_v63 = vadd.f32 %v1229_v61, %v1810_v50  ;;  %v634_v0 = vadd.f32 %v1277_v62, %v1810_v50  ;;  %v693_v1 = vmax.f32 %v567_v59, 0.0  ;;  %v709_v2 = vmax.f32 %v631_v60, 0.0 }
 0x152   : > { %v694_v3 = vmax.f32 %v570_v63, 0.0  ;;  %v710_v4 = vmax.f32 %v634_v0, 0.0  ;;  %v1230_v5 = vpop.f32.mrb[4].mxu0  ;;  %v1278_v6 = vpop.f32.mrb[4].mxu1 }
 0x153   : > { %v1231_v7 = vpop.f32.mrb[5].mxu0  ;;  %v1279_v8 = vpop.f32.mrb[5].mxu1 }
 0x154   : > { %v1116_v9 = vpack.c.bf16 %v694_v3, %v693_v1  ;;  %v1156_v10 = vpack.c.bf16 %v710_v4, %v709_v2  ;;  %v1232_v11 = vadd.f32 %v1231_v7, %v1230_v5  ;;  %v1280_v12 = vadd.f32 %v1279_v8, %v1278_v6  ;;  %v1233_v13 = vpop.f32.mrb[6].mxu0  ;;  %v1281_v14 = vpop.f32.mrb[6].mxu1 }
 0x155   : > { %v1234_v15 = vpop.f32.mrb[7].mxu0  ;;  %v1282_v16 = vpop.f32.mrb[7].mxu1 }
 0x156   : > { %1117 = vst [vmem:[%s1817_s25] sm:$0xff] %v1116_v9   ;;  %1200 = vst [vmem:[%s1817_s25 + $0x40] sm:$0xff] %v1156_v10   ;;  %v575_v17 = vadd.f32 %v1232_v11, %v1810_v50  ;;  %v639_v18 = vadd.f32 %v1280_v12, %v1810_v50  ;;  %v1235_v19 = vadd.f32 %v1234_v15, %v1233_v13 }
 0x157   : > { %v1283_v20 = vadd.f32 %v1282_v16, %v1281_v14 }
 0x158   : > { %v578_v21 = vadd.f32 %v1235_v19, %v1810_v50  ;;  %v695_v23 = vmax.f32 %v575_v17, 0.0  ;;  %v711_v24 = vmax.f32 %v639_v18, 0.0 }
 0x159   : > { %v642_v22 = vadd.f32 %v1283_v20, %v1810_v50 }
 0x15a   : > { %v696_v25 = vmax.f32 %v578_v21, 0.0  ;;  %v1236_v27 = vpop.f32.mrb[8].mxu0  ;;  %v1284_v28 = vpop.f32.mrb[8].mxu1 }
 0x15b   : > { %v712_v26 = vmax.f32 %v642_v22, 0.0  ;;  %v1237_v29 = vpop.f32.mrb[9].mxu0  ;;  %v1285_v30 = vpop.f32.mrb[9].mxu1 }
 0x15c   : > { %v1121_v31 = vpack.c.bf16 %v696_v25, %v695_v23  ;;  %v1238_v33 = vadd.f32 %v1237_v29, %v1236_v27  ;;  %v1286_v34 = vadd.f32 %v1285_v30, %v1284_v28  ;;  %v1239_v35 = vpop.f32.mrb[10].mxu0  ;;  %v1287_v36 = vpop.f32.mrb[10].mxu1 }
 0x15d   : > { %v1161_v32 = vpack.c.bf16 %v712_v26, %v711_v24  ;;  %v1240_v37 = vpop.f32.mrb[11].mxu0  ;;  %v1288_v38 = vpop.f32.mrb[11].mxu1 }
 0x15e   : > { %1193 = vst [vmem:[%s1817_s25 + $0x8] sm:$0xff] %v1121_v31   ;;  %v583_v39 = vadd.f32 %v1238_v33, %v1810_v50  ;;  %v647_v40 = vadd.f32 %v1286_v34, %v1810_v50  ;;  %v1241_v41 = vadd.f32 %v1240_v37, %v1239_v35  ;;  %v1289_v42 = vadd.f32 %v1288_v38, %v1287_v36 }
 0x15f   : > { %1201 = vst [vmem:[%s1817_s25 + $0x48] sm:$0xff] %v1161_v32  }
 0x160   : > { %v586_v43 = vadd.f32 %v1241_v41, %v1810_v50  ;;  %v650_v44 = vadd.f32 %v1289_v42, %v1810_v50  ;;  %v697_v45 = vmax.f32 %v583_v39, 0.0  ;;  %v713_v46 = vmax.f32 %v647_v40, 0.0 }
 0x162   : > { %v698_v47 = vmax.f32 %v586_v43, 0.0  ;;  %v714_v48 = vmax.f32 %v650_v44, 0.0  ;;  %v1242_v49 = vpop.f32.mrb[12].mxu0  ;;  %v1290_v51 = vpop.f32.mrb[12].mxu1 }
 0x163   : > { %v1243_v52 = vpop.f32.mrb[13].mxu0  ;;  %v1291_v53 = vpop.f32.mrb[13].mxu1 }
 0x164   : > { %v1126_v54 = vpack.c.bf16 %v698_v47, %v697_v45  ;;  %v1166_v55 = vpack.c.bf16 %v714_v48, %v713_v46  ;;  %v1244_v56 = vadd.f32 %v1243_v52, %v1242_v49  ;;  %v1292_v57 = vadd.f32 %v1291_v53, %v1290_v51  ;;  %v1245_v58 = vpop.f32.mrb[14].mxu0  ;;  %v1293_v59 = vpop.f32.mrb[14].mxu1 }
 0x165   : > { %v1246_v60 = vpop.f32.mrb[15].mxu0  ;;  %v1294_v61 = vpop.f32.mrb[15].mxu1 }
 0x166   : > { %1194 = vst [vmem:[%s1817_s25 + $0x10] sm:$0xff] %v1126_v54   ;;  %1202 = vst [vmem:[%s1817_s25 + $0x50] sm:$0xff] %v1166_v55   ;;  %v591_v62 = vadd.f32 %v1244_v56, %v1810_v50  ;;  %v655_v63 = vadd.f32 %v1292_v57, %v1810_v50  ;;  %v1247_v0 = vadd.f32 %v1246_v60, %v1245_v58 }
 0x167   : > { %v1295_v1 = vadd.f32 %v1294_v61, %v1293_v59 }
 0x168   : > { %v594_v2 = vadd.f32 %v1247_v0, %v1810_v50  ;;  %v699_v4 = vmax.f32 %v591_v62, 0.0  ;;  %v715_v5 = vmax.f32 %v655_v63, 0.0 }
 0x169   : > { %v658_v3 = vadd.f32 %v1295_v1, %v1810_v50 }
 0x16a   : > { %v700_v6 = vmax.f32 %v594_v2, 0.0  ;;  %v1248_v8 = vpop.f32.mrb[16].mxu0  ;;  %v1296_v9 = vpop.f32.mrb[16].mxu1 }
 0x16b   : > { %v716_v7 = vmax.f32 %v658_v3, 0.0  ;;  %v1249_v10 = vpop.f32.mrb[17].mxu0  ;;  %v1297_v11 = vpop.f32.mrb[17].mxu1 }
 0x16c   : > { %v1131_v12 = vpack.c.bf16 %v700_v6, %v699_v4  ;;  %v1250_v14 = vadd.f32 %v1249_v10, %v1248_v8  ;;  %v1298_v15 = vadd.f32 %v1297_v11, %v1296_v9  ;;  %v1251_v16 = vpop.f32.mrb[18].mxu0  ;;  %v1299_v17 = vpop.f32.mrb[18].mxu1 }
 0x16d   : > { %v1171_v13 = vpack.c.bf16 %v716_v7, %v715_v5  ;;  %v1252_v18 = vpop.f32.mrb[19].mxu0  ;;  %v1300_v19 = vpop.f32.mrb[19].mxu1 }
 0x16e   : > { %1195 = vst [vmem:[%s1817_s25 + $0x18] sm:$0xff] %v1131_v12   ;;  %v599_v20 = vadd.f32 %v1250_v14, %v1810_v50  ;;  %v663_v21 = vadd.f32 %v1298_v15, %v1810_v50  ;;  %v1253_v22 = vadd.f32 %v1252_v18, %v1251_v16  ;;  %v1301_v23 = vadd.f32 %v1300_v19, %v1299_v17 }
 0x16f   : > { %1203 = vst [vmem:[%s1817_s25 + $0x58] sm:$0xff] %v1171_v13  }
 0x170   : > { %v602_v24 = vadd.f32 %v1253_v22, %v1810_v50  ;;  %v666_v25 = vadd.f32 %v1301_v23, %v1810_v50  ;;  %v701_v26 = vmax.f32 %v599_v20, 0.0  ;;  %v717_v27 = vmax.f32 %v663_v21, 0.0 }
 0x172   : > { %v702_v28 = vmax.f32 %v602_v24, 0.0  ;;  %v718_v29 = vmax.f32 %v666_v25, 0.0  ;;  %v1254_v30 = vpop.f32.mrb[20].mxu0  ;;  %v1302_v31 = vpop.f32.mrb[20].mxu1 }
 0x173   : > { %v1255_v32 = vpop.f32.mrb[21].mxu0  ;;  %v1303_v33 = vpop.f32.mrb[21].mxu1 }
 0x174   : > { %v1136_v34 = vpack.c.bf16 %v702_v28, %v701_v26  ;;  %v1176_v35 = vpack.c.bf16 %v718_v29, %v717_v27  ;;  %v1256_v36 = vadd.f32 %v1255_v32, %v1254_v30  ;;  %v1304_v37 = vadd.f32 %v1303_v33, %v1302_v31  ;;  %v1257_v38 = vpop.f32.mrb[22].mxu0  ;;  %v1305_v39 = vpop.f32.mrb[22].mxu1 }
 0x175   : > { %v1258_v40 = vpop.f32.mrb[23].mxu0  ;;  %v1306_v41 = vpop.f32.mrb[23].mxu1 }
 0x176   : > { %1196 = vst [vmem:[%s1817_s25 + $0x20] sm:$0xff] %v1136_v34   ;;  %1204 = vst [vmem:[%s1817_s25 + $0x60] sm:$0xff] %v1176_v35   ;;  %v607_v42 = vadd.f32 %v1256_v36, %v1810_v50  ;;  %v671_v43 = vadd.f32 %v1304_v37, %v1810_v50  ;;  %v1259_v44 = vadd.f32 %v1258_v40, %v1257_v38 }
 0x177   : > { %v1307_v45 = vadd.f32 %v1306_v41, %v1305_v39 }
 0x178   : > { %v610_v46 = vadd.f32 %v1259_v44, %v1810_v50  ;;  %v703_v48 = vmax.f32 %v607_v42, 0.0  ;;  %v719_v49 = vmax.f32 %v671_v43, 0.0 }
 0x179   : > { %v674_v47 = vadd.f32 %v1307_v45, %v1810_v50 }
 0x17a   : > { %v704_v51 = vmax.f32 %v610_v46, 0.0  ;;  %v1260_v53 = vpop.f32.mrb[24].mxu0  ;;  %v1308_v54 = vpop.f32.mrb[24].mxu1 }
 0x17b   : > { %v720_v52 = vmax.f32 %v674_v47, 0.0  ;;  %v1261_v55 = vpop.f32.mrb[25].mxu0  ;;  %v1309_v56 = vpop.f32.mrb[25].mxu1 }
 0x17c   : > { %v1141_v57 = vpack.c.bf16 %v704_v51, %v703_v48  ;;  %v1262_v59 = vadd.f32 %v1261_v55, %v1260_v53  ;;  %v1310_v60 = vadd.f32 %v1309_v56, %v1308_v54  ;;  %v1263_v61 = vpop.f32.mrb[26].mxu0  ;;  %v1311_v62 = vpop.f32.mrb[26].mxu1 }
 0x17d   : > { %v1181_v58 = vpack.c.bf16 %v720_v52, %v719_v49  ;;  %v1264_v63 = vpop.f32.mrb[27].mxu0  ;;  %v1312_v0 = vpop.f32.mrb[27].mxu1 }
 0x17e   : > { %1197 = vst [vmem:[%s1817_s25 + $0x28] sm:$0xff] %v1141_v57   ;;  %v615_v1 = vadd.f32 %v1262_v59, %v1810_v50  ;;  %v679_v2 = vadd.f32 %v1310_v60, %v1810_v50  ;;  %v1265_v3 = vadd.f32 %v1264_v63, %v1263_v61  ;;  %v1313_v4 = vadd.f32 %v1312_v0, %v1311_v62 }
 0x17f   : > { %1205 = vst [vmem:[%s1817_s25 + $0x68] sm:$0xff] %v1181_v58  }
 0x180   : > { %v618_v5 = vadd.f32 %v1265_v3, %v1810_v50  ;;  %v682_v6 = vadd.f32 %v1313_v4, %v1810_v50  ;;  %v705_v7 = vmax.f32 %v615_v1, 0.0  ;;  %v721_v8 = vmax.f32 %v679_v2, 0.0 }
 0x182   : > { %v706_v9 = vmax.f32 %v618_v5, 0.0  ;;  %v722_v10 = vmax.f32 %v682_v6, 0.0  ;;  %v1266_v11 = vpop.f32.mrb[28].mxu0  ;;  %v1314_v12 = vpop.f32.mrb[28].mxu1 }
 0x183   : > { %v1267_v13 = vpop.f32.mrb[29].mxu0  ;;  %v1315_v14 = vpop.f32.mrb[29].mxu1 }
 0x184   : > { %v1146_v15 = vpack.c.bf16 %v706_v9, %v705_v7  ;;  %v1186_v16 = vpack.c.bf16 %v722_v10, %v721_v8  ;;  %v1268_v17 = vadd.f32 %v1267_v13, %v1266_v11  ;;  %v1316_v18 = vadd.f32 %v1315_v14, %v1314_v12  ;;  %v1269_v19 = vpop.f32.mrb[30].mxu0  ;;  %v1317_v20 = vpop.f32.mrb[30].mxu1 }
 0x185   : > { %v1270_v21 = vpop.f32.mrb[31].mxu0  ;;  %v1318_v22 = vpop.f32.mrb[31].mxu1 }
 0x186   : > { %1198 = vst [vmem:[%s1817_s25 + $0x30] sm:$0xff] %v1146_v15   ;;  %1206 = vst [vmem:[%s1817_s25 + $0x70] sm:$0xff] %v1186_v16   ;;  %v623_v23 = vadd.f32 %v1268_v17, %v1810_v50  ;;  %v687_v24 = vadd.f32 %v1316_v18, %v1810_v50  ;;  %v1271_v25 = vadd.f32 %v1270_v21, %v1269_v19 }
 0x187   : > { %v1319_v26 = vadd.f32 %v1318_v22, %v1317_v20 }
 0x188   : > { %v626_v27 = vadd.f32 %v1271_v25, %v1810_v50  ;;  %v707_v29 = vmax.f32 %v623_v23, 0.0  ;;  %v723_v30 = vmax.f32 %v687_v24, 0.0 }
 0x189   : > { %v690_v28 = vadd.f32 %v1319_v26, %v1810_v50 }
 0x18a   : > { %v708_v31 = vmax.f32 %v626_v27, 0.0 }
 0x18b   : > { %v724_v32 = vmax.f32 %v690_v28, 0.0 }
 0x18c   : > { %v1151_v33 = vpack.c.bf16 %v708_v31, %v707_v29 }
 0x18d   : > { %v1191_v34 = vpack.c.bf16 %v724_v32, %v723_v30 }
 0x18e   : > { %1199 = vst [vmem:[%s1817_s25 + $0x38] sm:$0xff] %v1151_v33  }
 0x18f   : > { %1207 = vst [vmem:[%s1817_s25 + $0x78] sm:$0xff] %v1191_v34  }
 0x190   : > { %1534 = shalt.err (!%p1531_p7)
}
 0x191   : > { %s1535_s22 = scalar_lea.hbm %s1866_s27, 2048  ;;  %s1539_s9 = scalar_lea.hbm %s1917_s3, 4096 }
 0x192   : > { %p1536_p9 = scmp.ne.s32.totalorder %s1866_s27, %s1535_s22  ;;  %p1540_p5 = scmp.lt.u32.totalorder %s1866_s27, %s1917_s3 }
 0x193   : > { %p1541_p11 = scmp.lt.u32.totalorder %s1539_s9, %s1535_s22  ;;  %p1543_p4 = scmp.lt.u32.totalorder %s1535_s22, %s1866_s27 }
 0x194   : > { %p1537_p2 = pnand %p1536_p9, %p1713_p12 }
 0x195   : > { %p1542_p1 = por %p1541_p11, %p1540_p5 }
 0x196   : > { %p1538_p0 = pneg %p1537_p2 }
 0x197   : > { %p1544_p6 = por %p1543_p4, %p1542_p1 }
 0x199   : > { %p1545_p8 = pnand %p1544_p6, %p1538_p0 }
 0x19b   : > { %1548 = shalt.err (!%p1545_p8)
}
 0x19c   : > { %s1600_s4 = smov 64   ;;  %s1601_s25 = smov 4  }
 0x19d   : > { %1342 = dma.vmem_to_hbm [thread:$0]  (%p1713_p12), %s1868_s5, 2048, %s1866_s27, %s886_s16, %s1600_s4, %s1600_s4, %s1601_s25  }
 0x19e PF: > { %s914_s26 = sand.u32 1, %s1579_s12   ;;  %p1932_p10 = scmp.ne.s32.totalorder %s1922_s19, 0 }
 0x19f   : > { %p1933_p13 = scmp.ge.s32.totalorder %s1591_s15, 2  ;;  %s915_s10 = scalar_lea.sflag [#allocation4], %s914_s26 }
 0x1a1   : > { %p1353_p3 = pnand %p1933_p13, %p1932_p10 }
 0x1a3   : > { %1574 = dma.done.wait (!%p1353_p3), %s915_s10, 2048  }
 0x1a4   : > { %1576 = vsyncadd (!%p1353_p3), %s915_s10, 4294965248  ;;  %p17_p7 = scmp.ge.s32.totalorder %s1678_s24, 4   ;;  %s1934_s12 = smov %s1583_s13 }
 0x1a5   : > { %s1935_s13 = smov %s1587_s14  ;;  %s1936_s14 = smov %s1709_s17 }
 0x1a6   : > { %s1937_s15 = smov %s1678_s24  ;;  %19 = sbr.rel (!%p17_p7) target bundleno = 6 (0x6), region = 81 }
 0x1ad   :  { %920 = vsyncpa [#allocation3], 1 }
 0x1ae   :  { %922 = vsyncpa [#allocation3 + $0x1], 1 }
 0x1af   :  { %923 = vsyncpa [#allocation6], 1 }
 0x1b0   :  { %924 = vsyncpa [#allocation4], 1 }
 0x1b1   :  { %926 = vsyncpa [#allocation4 + $0x1], 1 }

</bundles_post_ra>
